<compile_context>
chip_gen: v6e
topology: v6e:2x2x1
jax: 0.10.0
libtpu: 0.0.40
codegen_flags: <defaults>
</compile_context>

<pallas_src>
import functools

import numpy as np

import jax
import jax.numpy as jnp
from jax.experimental import pallas as pl
from jax.experimental.pallas import tpu as pltpu


# --------------------------------------------------------------------------
# Kernel
# --------------------------------------------------------------------------
def _pixel_shuffle_kernel(idx_ref, x_ref, o_ref, *, r: int, tc: int):
    """One (batch*channel-block, row-block) grid step.

    idx_ref: (1, r*r*W) int32   static interleave table (same block each step)
    x_ref:   (tc*r*r, TH, W)    the r^2 input channels of `tc` output channels
    o_ref:   (tc, TH, r*r*W)    matching rows of the (B*Cb, tc, H, r*r*W) view
    """
    rr = r * r
    th = x_ref.shape[1]
    k = idx_ref.shape[-1]
    # Hoisted once per grid step (cheap sublane replication of one index row).
    idx = jnp.broadcast_to(idx_ref[...], (th, k))
    for t in range(tc):                       # static unroll; tc is small
        parts = [x_ref[t * rr + q] for q in range(rr)]        # rr x (TH, W)
        # One lane-axis concat per output channel (only relayout work left;
        # it is vreg-aligned whenever W % 128 == 0).
        z = parts[0] if rr == 1 else jnp.concatenate(parts, axis=-1)
        # One full-width static-index gather, one dense full-width store.
        o_ref[t] = jnp.take_along_axis(z, idx, axis=-1)


# --------------------------------------------------------------------------
# Host-side helpers (all static / trace-time Python)
# --------------------------------------------------------------------------
def _interleave_index_table(r: int, w: int) -> np.ndarray:
    """out[:, i*(r*W) + w*r + j] = z[:, (i*r + j)*W + w] for the concat z."""
    k = np.arange(r * r * w)
    i = k // (r * w)
    rem = k % (r * w)
    ww = rem // r
    j = rem % r
    return ((i * r + j) * w + ww).astype(np.int32).reshape(1, -1)


def _vmem_capacity_bytes() -> int:
    try:
        return int(pltpu.get_tpu_info().vmem_capacity_bytes)
    except Exception:
        return 64 * 1024 * 1024        # conservative (v7x-sized) fallback


def _sublane_step(itemsize: int) -> int:
    # 8 rows for 4-byte dtypes, 16 for 2-byte, 32 for 1-byte (packing dir.).
    return max(8, 32 // max(itemsize, 1))


def _choose_blocks(h: int, c: int, out_row_bytes: int, step: int,
                   budget: int) -> tuple[int, int]:
    """Pick (TH rows, TC output channels) per grid step within `budget` bytes."""
    max_rows = max(1, budget // max(out_row_bytes, 1))
    if h <= max_rows:
        th = h
    else:
        aligned = [d for d in range(step, max_rows + 1, step) if h % d == 0]
        if aligned:
            th = max(aligned)
        else:
            # No sublane-aligned divisor fits: aligned non-dividing block,
            # grid uses cdiv and Pallas pads/masks the ragged edge.
            th = max(step, (max_rows // step) * step)
    tc = 1
    if th == h:                       # whole channel fits -> block channels too
        chan_bytes = h * out_row_bytes
        max_ch = max(1, budget // max(chan_bytes, 1))
        divs = [d for d in range(1, min(c, max_ch) + 1) if c % d == 0]
        if divs:
            tc = max(divs)
    return th, tc


# --------------------------------------------------------------------------
# Public entry point
# --------------------------------------------------------------------------
@functools.partial(jax.jit, static_argnames=("upscale_factor",))
def pixel_shuffle(x: jax.Array, upscale_factor: int) -> jax.Array:
    """Pallas TPU equivalent of torch.nn.PixelShuffle(upscale_factor)."""
    r = int(upscale_factor)
    b, c_rr, h, w = x.shape
    if r < 1:
        raise ValueError(f"upscale_factor must be >= 1, got {r}")
    if c_rr % (r * r) != 0:
        raise ValueError(
            f"channels ({c_rr}) must be divisible by upscale_factor^2 ({r * r})")
    if r == 1:
        return x
    c = c_rr // (r * r)
    w_out = r * r * w
    itemsize = x.dtype.itemsize

    # Generation-aware VMEM budget (v7x: 64 MiB VMEM -> 40 MiB limit, 8 MiB
    # per block; v5e/v6e: 128 MiB -> 80 MiB limit, 12 MiB per block).  Total
    # pipelined VMEM ~ 2x input + 2x output blocks = 4x block_budget.
    vmem_cap = _vmem_capacity_bytes()
    vmem_limit = min((vmem_cap * 5) // 8, 80 * 1024 * 1024)
    block_budget = min(12 * 1024 * 1024,
                       max(1 * 1024 * 1024, (vmem_limit - 8 * 1024 * 1024) // 4))

    step = _sublane_step(itemsize)
    th, tc = _choose_blocks(h, c, w_out * itemsize, step, block_budget)

    # Make sure at least one parallel axis has extent >= 2 when possible so
    # both v7x TensorCores get work (also helps v5e/v6e pipelining).
    if b * (c // tc) * pl.cdiv(h, th) < 2:
        if c > 1:
            tc = max(d for d in range(1, c) if c % d == 0)
        elif th == h and h > 1:
            cands = [d for d in range(step, h, step) if h % d == 0]
            if cands:
                th = max(cands)

    g = b * (c // tc)                 # folded batch x channel-block axis
    grid = (g, pl.cdiv(h, th))

    # Free (metadata-only) input view: (B, C*r^2, H, W) -> (G, tc*r^2, H, W).
    x_view = x.reshape(g, tc * r * r, h, w)
    idx = jnp.asarray(_interleave_index_table(r, w))          # (1, r*r*W) i32

    out_view = pl.pallas_call(
        functools.partial(_pixel_shuffle_kernel, r=r, tc=tc),
        out_shape=jax.ShapeDtypeStruct((g, tc, h, w_out), x.dtype),
        grid=grid,
        in_specs=[
            # Static interleave table; block index never changes.
            pl.BlockSpec((1, w_out), lambda gi, hi: (0, 0)),
            # tc output channels' worth of input channels, TH rows, full W.
            pl.BlockSpec((None, tc * r * r, th, w), lambda gi, hi: (gi, 0, hi, 0)),
        ],
        # Lane-dense output block: full shuffled row width (r*W*r) on lanes.
        out_specs=pl.BlockSpec((None, tc, th, w_out), lambda gi, hi: (gi, 0, hi, 0)),
        compiler_params=pltpu.CompilerParams(
            dimension_semantics=("parallel", "parallel"),
            vmem_limit_bytes=int(vmem_limit),
        ),
    )(idx, x_view)

    # Free reshape: (G, tc, H, r*W*r) and (B, C, H*r, W*r) share the exact
    # same flat layout -> metadata-only, no extra HBM pass.
    return out_view.reshape(b, c, h * r, w * r)


class PixelShuffle:
    """Mirror of the PyTorch module's forward pass."""

    def __init__(self, upscale_factor: int) -> None:
        self.upscale_factor = upscale_factor

    def __call__(self, x: jax.Array) -> jax.Array:
        return pixel_shuffle(x, upscale_factor=self.upscale_factor)


def _pixel_shuffle_reference(x: jax.Array, r: int) -> jax.Array:
    """Pure-JAX reference (matches torch.nn.functional.pixel_shuffle)."""
    b, c_rr, h, w = x.shape
    c = c_rr // (r * r)
    y = x.reshape(b, c, r, r, h, w)
    y = jnp.transpose(y, (0, 1, 4, 2, 5, 3))
    return y.reshape(b, c, h * r, w * r)


if __name__ == "__main__":
    key = jax.random.PRNGKey(0)
    k1, k2 = jax.random.split(key)

    # Main case: r=2, (B, C*r^2, H, W) = (2, 16, 16, 16) -> (2, 4, 32, 32)
    x = jax.random.normal(k1, (2, 16, 16, 16), dtype=jnp.float32)
    mod = PixelShuffle(2)
    y = jax.block_until_ready(mod(x))
    y_ref = _pixel_shuffle_reference(x, 2)
    assert y.shape == (2, 4, 32, 32), y.shape
    assert bool(jnp.array_equal(y, y_ref)), "PixelShuffle r=2 mismatch vs reference"

    # Second small case: r=3, (1, 18, 8, 8) -> (1, 2, 24, 24)
    x2 = jax.random.normal(k2, (1, 18, 8, 8), dtype=jnp.float32)
    y2 = jax.block_until_ready(pixel_shuffle(x2, upscale_factor=3))
    assert y2.shape == (1, 2, 24, 24), y2.shape
    assert bool(jnp.array_equal(y2, _pixel_shuffle_reference(x2, 3))), \
        "PixelShuffle r=3 mismatch vs reference"

    print("KERNEL_OK")
</pallas_src>

<mosaic_0001>
module attributes {stable_mosaic.version = 11 : i64} {
  func.func @_pixel_shuffle_kernel(%arg0: i32, %arg1: i32, %arg2: memref<1x64xi32, #tpu.memory_space<vmem>>, %arg3: memref<1x16x16x16xf32, #tpu.memory_space<vmem>>, %arg4: memref<1x4x16x64xf32, #tpu.memory_space<vmem>>) attributes {dimension_semantics = [#tpu.dimension_semantics<parallel>, #tpu.dimension_semantics<parallel>], iteration_bounds = array<i64: 2, 1>, scalar_prefetch = 0 : i64, scratch_operands = 0 : i64, tpu.core_type = #tpu.core_type<tc>, window_params = [{pipeline_mode = #tpu.pipeline_mode<synchronous>, transform_indices = @transform_0, window_bounds = array<i64: 1, 64>}, {transform_indices = @transform_1, window_bounds = array<i64: 1, 16, 16, 16>}, {transform_indices = @transform_2, window_bounds = array<i64: 1, 4, 16, 64>}]} {
    %c0 = arith.constant 0 : index
    %c0_0 = arith.constant 0 : index
    %0 = vector.load %arg2[%c0, %c0_0] : memref<1x64xi32, #tpu.memory_space<vmem>>, vector<1x64xi32>
    %1 = vector.shape_cast %0 : vector<1x64xi32> to vector<1x64xi32>
    %2 = vector.broadcast %1 : vector<1x64xi32> to vector<16x64xi32>
    %c0_1 = arith.constant 0 : index
    %c0_2 = arith.constant 0 : index
    %c0_3 = arith.constant 0 : index
    %c0_4 = arith.constant 0 : index
    %3 = vector.load %arg3[%c0_1, %c0_2, %c0_3, %c0_4] : memref<1x16x16x16xf32, #tpu.memory_space<vmem>>, vector<1x1x16x16xf32>
    %4 = vector.shape_cast %3 : vector<1x1x16x16xf32> to vector<16x16xf32>
    %c0_5 = arith.constant 0 : index
    %c1 = arith.constant 1 : index
    %c0_6 = arith.constant 0 : index
    %c0_7 = arith.constant 0 : index
    %5 = vector.load %arg3[%c0_5, %c1, %c0_6, %c0_7] : memref<1x16x16x16xf32, #tpu.memory_space<vmem>>, vector<1x1x16x16xf32>
    %6 = vector.shape_cast %5 : vector<1x1x16x16xf32> to vector<16x16xf32>
    %c0_8 = arith.constant 0 : index
    %c2 = arith.constant 2 : index
    %c0_9 = arith.constant 0 : index
    %c0_10 = arith.constant 0 : index
    %7 = vector.load %arg3[%c0_8, %c2, %c0_9, %c0_10] : memref<1x16x16x16xf32, #tpu.memory_space<vmem>>, vector<1x1x16x16xf32>
    %8 = vector.shape_cast %7 : vector<1x1x16x16xf32> to vector<16x16xf32>
    %c0_11 = arith.constant 0 : index
    %c3 = arith.constant 3 : index
    %c0_12 = arith.constant 0 : index
    %c0_13 = arith.constant 0 : index
    %9 = vector.load %arg3[%c0_11, %c3, %c0_12, %c0_13] : memref<1x16x16x16xf32, #tpu.memory_space<vmem>>, vector<1x1x16x16xf32>
    %10 = vector.shape_cast %9 : vector<1x1x16x16xf32> to vector<16x16xf32>
    %11 = tpu.concatenate %4, %6, %8, %10 in 1 : vector<16x16xf32>, vector<16x16xf32>, vector<16x16xf32>, vector<16x16xf32> -> vector<16x64xf32>
    %c0_i32 = arith.constant 0 : i32
    %12 = vector.broadcast %c0_i32 : i32 to vector<16x64xi32>
    %13 = arith.cmpi slt, %2, %12 : vector<16x64xi32>
    %c64_i32 = arith.constant 64 : i32
    %14 = vector.broadcast %c64_i32 : i32 to vector<16x64xi32>
    %15 = arith.addi %2, %14 : vector<16x64xi32>
    %16 = arith.select %13, %15, %2 : vector<16x64xi1>, vector<16x64xi32>
    %17 = vector.shape_cast %16 : vector<16x64xi32> to vector<16x64x1xi32>
    %18 = vector.shape_cast %17 : vector<16x64x1xi32> to vector<16x64xi32>
    %19 = tpu.dynamic_gather %11[%18] in [1] : vector<16x64xf32>, vector<16x64xi32> -> vector<16x64xf32>
    %c0_14 = arith.constant 0 : index
    %c0_15 = arith.constant 0 : index
    %c0_16 = arith.constant 0 : index
    %c0_17 = arith.constant 0 : index
    %20 = vector.load %arg4[%c0_14, %c0_15, %c0_16, %c0_17] : memref<1x4x16x64xf32, #tpu.memory_space<vmem>>, vector<1x1x16x64xf32>
    %21 = vector.shape_cast %20 : vector<1x1x16x64xf32> to vector<16x64xf32>
    %22 = vector.shape_cast %19 : vector<16x64xf32> to vector<1x1x16x64xf32>
    tpu.vector_store %arg4[%c0_14, %c0_15, %c0_16, %c0_17], %22 {strides = array<i32>} : memref<1x4x16x64xf32, #tpu.memory_space<vmem>>, vector<1x1x16x64xf32>,
    %c0_18 = arith.constant 0 : index
    %c4 = arith.constant 4 : index
    %c0_19 = arith.constant 0 : index
    %c0_20 = arith.constant 0 : index
    %23 = vector.load %arg3[%c0_18, %c4, %c0_19, %c0_20] : memref<1x16x16x16xf32, #tpu.memory_space<vmem>>, vector<1x1x16x16xf32>
    %24 = vector.shape_cast %23 : vector<1x1x16x16xf32> to vector<16x16xf32>
    %c0_21 = arith.constant 0 : index
    %c5 = arith.constant 5 : index
    %c0_22 = arith.constant 0 : index
    %c0_23 = arith.constant 0 : index
    %25 = vector.load %arg3[%c0_21, %c5, %c0_22, %c0_23] : memref<1x16x16x16xf32, #tpu.memory_space<vmem>>, vector<1x1x16x16xf32>
    %26 = vector.shape_cast %25 : vector<1x1x16x16xf32> to vector<16x16xf32>
    %c0_24 = arith.constant 0 : index
    %c6 = arith.constant 6 : index
    %c0_25 = arith.constant 0 : index
    %c0_26 = arith.constant 0 : index
    %27 = vector.load %arg3[%c0_24, %c6, %c0_25, %c0_26] : memref<1x16x16x16xf32, #tpu.memory_space<vmem>>, vector<1x1x16x16xf32>
    %28 = vector.shape_cast %27 : vector<1x1x16x16xf32> to vector<16x16xf32>
    %c0_27 = arith.constant 0 : index
    %c7 = arith.constant 7 : index
    %c0_28 = arith.constant 0 : index
    %c0_29 = arith.constant 0 : index
    %29 = vector.load %arg3[%c0_27, %c7, %c0_28, %c0_29] : memref<1x16x16x16xf32, #tpu.memory_space<vmem>>, vector<1x1x16x16xf32>
    %30 = vector.shape_cast %29 : vector<1x1x16x16xf32> to vector<16x16xf32>
    %31 = tpu.concatenate %24, %26, %28, %30 in 1 : vector<16x16xf32>, vector<16x16xf32>, vector<16x16xf32>, vector<16x16xf32> -> vector<16x64xf32>
    %c0_i32_30 = arith.constant 0 : i32
    %32 = vector.broadcast %c0_i32_30 : i32 to vector<16x64xi32>
    %33 = arith.cmpi slt, %2, %32 : vector<16x64xi32>
    %c64_i32_31 = arith.constant 64 : i32
    %34 = vector.broadcast %c64_i32_31 : i32 to vector<16x64xi32>
    %35 = arith.addi %2, %34 : vector<16x64xi32>
    %36 = arith.select %33, %35, %2 : vector<16x64xi1>, vector<16x64xi32>
    %37 = vector.shape_cast %36 : vector<16x64xi32> to vector<16x64x1xi32>
    %38 = vector.shape_cast %37 : vector<16x64x1xi32> to vector<16x64xi32>
    %39 = tpu.dynamic_gather %31[%38] in [1] : vector<16x64xf32>, vector<16x64xi32> -> vector<16x64xf32>
    %c0_32 = arith.constant 0 : index
    %c1_33 = arith.constant 1 : index
    %c0_34 = arith.constant 0 : index
    %c0_35 = arith.constant 0 : index
    %40 = vector.load %arg4[%c0_32, %c1_33, %c0_34, %c0_35] : memref<1x4x16x64xf32, #tpu.memory_space<vmem>>, vector<1x1x16x64xf32>
    %41 = vector.shape_cast %40 : vector<1x1x16x64xf32> to vector<16x64xf32>
    %42 = vector.shape_cast %39 : vector<16x64xf32> to vector<1x1x16x64xf32>
    tpu.vector_store %arg4[%c0_32, %c1_33, %c0_34, %c0_35], %42 {strides = array<i32>} : memref<1x4x16x64xf32, #tpu.memory_space<vmem>>, vector<1x1x16x64xf32>,
    %c0_36 = arith.constant 0 : index
    %c8 = arith.constant 8 : index
    %c0_37 = arith.constant 0 : index
    %c0_38 = arith.constant 0 : index
    %43 = vector.load %arg3[%c0_36, %c8, %c0_37, %c0_38] : memref<1x16x16x16xf32, #tpu.memory_space<vmem>>, vector<1x1x16x16xf32>
    %44 = vector.shape_cast %43 : vector<1x1x16x16xf32> to vector<16x16xf32>
    %c0_39 = arith.constant 0 : index
    %c9 = arith.constant 9 : index
    %c0_40 = arith.constant 0 : index
    %c0_41 = arith.constant 0 : index
    %45 = vector.load %arg3[%c0_39, %c9, %c0_40, %c0_41] : memref<1x16x16x16xf32, #tpu.memory_space<vmem>>, vector<1x1x16x16xf32>
    %46 = vector.shape_cast %45 : vector<1x1x16x16xf32> to vector<16x16xf32>
    %c0_42 = arith.constant 0 : index
    %c10 = arith.constant 10 : index
    %c0_43 = arith.constant 0 : index
    %c0_44 = arith.constant 0 : index
    %47 = vector.load %arg3[%c0_42, %c10, %c0_43, %c0_44] : memref<1x16x16x16xf32, #tpu.memory_space<vmem>>, vector<1x1x16x16xf32>
    %48 = vector.shape_cast %47 : vector<1x1x16x16xf32> to vector<16x16xf32>
    %c0_45 = arith.constant 0 : index
    %c11 = arith.constant 11 : index
    %c0_46 = arith.constant 0 : index
    %c0_47 = arith.constant 0 : index
    %49 = vector.load %arg3[%c0_45, %c11, %c0_46, %c0_47] : memref<1x16x16x16xf32, #tpu.memory_space<vmem>>, vector<1x1x16x16xf32>
    %50 = vector.shape_cast %49 : vector<1x1x16x16xf32> to vector<16x16xf32>
    %51 = tpu.concatenate %44, %46, %48, %50 in 1 : vector<16x16xf32>, vector<16x16xf32>, vector<16x16xf32>, vector<16x16xf32> -> vector<16x64xf32>
    %c0_i32_48 = arith.constant 0 : i32
    %52 = vector.broadcast %c0_i32_48 : i32 to vector<16x64xi32>
    %53 = arith.cmpi slt, %2, %52 : vector<16x64xi32>
    %c64_i32_49 = arith.constant 64 : i32
    %54 = vector.broadcast %c64_i32_49 : i32 to vector<16x64xi32>
    %55 = arith.addi %2, %54 : vector<16x64xi32>
    %56 = arith.select %53, %55, %2 : vector<16x64xi1>, vector<16x64xi32>
    %57 = vector.shape_cast %56 : vector<16x64xi32> to vector<16x64x1xi32>
    %58 = vector.shape_cast %57 : vector<16x64x1xi32> to vector<16x64xi32>
    %59 = tpu.dynamic_gather %51[%58] in [1] : vector<16x64xf32>, vector<16x64xi32> -> vector<16x64xf32>
    %c0_50 = arith.constant 0 : index
    %c2_51 = arith.constant 2 : index
    %c0_52 = arith.constant 0 : index
    %c0_53 = arith.constant 0 : index
    %60 = vector.load %arg4[%c0_50, %c2_51, %c0_52, %c0_53] : memref<1x4x16x64xf32, #tpu.memory_space<vmem>>, vector<1x1x16x64xf32>
    %61 = vector.shape_cast %60 : vector<1x1x16x64xf32> to vector<16x64xf32>
    %62 = vector.shape_cast %59 : vector<16x64xf32> to vector<1x1x16x64xf32>
    tpu.vector_store %arg4[%c0_50, %c2_51, %c0_52, %c0_53], %62 {strides = array<i32>} : memref<1x4x16x64xf32, #tpu.memory_space<vmem>>, vector<1x1x16x64xf32>,
    %c0_54 = arith.constant 0 : index
    %c12 = arith.constant 12 : index
    %c0_55 = arith.constant 0 : index
    %c0_56 = arith.constant 0 : index
    %63 = vector.load %arg3[%c0_54, %c12, %c0_55, %c0_56] : memref<1x16x16x16xf32, #tpu.memory_space<vmem>>, vector<1x1x16x16xf32>
    %64 = vector.shape_cast %63 : vector<1x1x16x16xf32> to vector<16x16xf32>
    %c0_57 = arith.constant 0 : index
    %c13 = arith.constant 13 : index
    %c0_58 = arith.constant 0 : index
    %c0_59 = arith.constant 0 : index
    %65 = vector.load %arg3[%c0_57, %c13, %c0_58, %c0_59] : memref<1x16x16x16xf32, #tpu.memory_space<vmem>>, vector<1x1x16x16xf32>
    %66 = vector.shape_cast %65 : vector<1x1x16x16xf32> to vector<16x16xf32>
    %c0_60 = arith.constant 0 : index
    %c14 = arith.constant 14 : index
    %c0_61 = arith.constant 0 : index
    %c0_62 = arith.constant 0 : index
    %67 = vector.load %arg3[%c0_60, %c14, %c0_61, %c0_62] : memref<1x16x16x16xf32, #tpu.memory_space<vmem>>, vector<1x1x16x16xf32>
    %68 = vector.shape_cast %67 : vector<1x1x16x16xf32> to vector<16x16xf32>
    %c0_63 = arith.constant 0 : index
    %c15 = arith.constant 15 : index
    %c0_64 = arith.constant 0 : index
    %c0_65 = arith.constant 0 : index
    %69 = vector.load %arg3[%c0_63, %c15, %c0_64, %c0_65] : memref<1x16x16x16xf32, #tpu.memory_space<vmem>>, vector<1x1x16x16xf32>
    %70 = vector.shape_cast %69 : vector<1x1x16x16xf32> to vector<16x16xf32>
    %71 = tpu.concatenate %64, %66, %68, %70 in 1 : vector<16x16xf32>, vector<16x16xf32>, vector<16x16xf32>, vector<16x16xf32> -> vector<16x64xf32>
    %c0_i32_66 = arith.constant 0 : i32
    %72 = vector.broadcast %c0_i32_66 : i32 to vector<16x64xi32>
    %73 = arith.cmpi slt, %2, %72 : vector<16x64xi32>
    %c64_i32_67 = arith.constant 64 : i32
    %74 = vector.broadcast %c64_i32_67 : i32 to vector<16x64xi32>
    %75 = arith.addi %2, %74 : vector<16x64xi32>
    %76 = arith.select %73, %75, %2 : vector<16x64xi1>, vector<16x64xi32>
    %77 = vector.shape_cast %76 : vector<16x64xi32> to vector<16x64x1xi32>
    %78 = vector.shape_cast %77 : vector<16x64x1xi32> to vector<16x64xi32>
    %79 = tpu.dynamic_gather %71[%78] in [1] : vector<16x64xf32>, vector<16x64xi32> -> vector<16x64xf32>
    %c0_68 = arith.constant 0 : index
    %c3_69 = arith.constant 3 : index
    %c0_70 = arith.constant 0 : index
    %c0_71 = arith.constant 0 : index
    %80 = vector.load %arg4[%c0_68, %c3_69, %c0_70, %c0_71] : memref<1x4x16x64xf32, #tpu.memory_space<vmem>>, vector<1x1x16x64xf32>
    %81 = vector.shape_cast %80 : vector<1x1x16x64xf32> to vector<16x64xf32>
    %82 = vector.shape_cast %79 : vector<16x64xf32> to vector<1x1x16x64xf32>
    tpu.vector_store %arg4[%c0_68, %c3_69, %c0_70, %c0_71], %82 {strides = array<i32>} : memref<1x4x16x64xf32, #tpu.memory_space<vmem>>, vector<1x1x16x64xf32>,
    return
  }
  func.func @transform_0(%arg0: i32, %arg1: i32) -> (i32, i32) {
    %c0_i32 = arith.constant 0 : i32
    %c0_i32_0 = arith.constant 0 : i32
    %c0_i32_1 = arith.constant 0 : i32
    return %c0_i32, %c0_i32_0 : i32, i32
  }
  func.func @transform_1(%arg0: i32, %arg1: i32) -> (i32, i32, i32, i32) {
    %c0_i32 = arith.constant 0 : i32
    %c0_i32_0 = arith.constant 0 : i32
    %c0_i32_1 = arith.constant 0 : i32
    return %arg0, %c0_i32, %arg1, %c0_i32_0 : i32, i32, i32, i32
  }
  func.func @transform_2(%arg0: i32, %arg1: i32) -> (i32, i32, i32, i32) {
    %c0_i32 = arith.constant 0 : i32
    %c0_i32_0 = arith.constant 0 : i32
    %c0_i32_1 = arith.constant 0 : i32
    return %arg0, %c0_i32, %arg1, %c0_i32_0 : i32, i32, i32, i32
  }
}

</mosaic_0001>

<bundles_post_ra>
// kernel: pixel_shuffle.1
= control target key start
LH: loop header
LB: loop body
LE: loop exit
PB: predicated region body
PF: predicated region fallthrough
CT: control target
= control target key end

     0   :  { %7 = vsyncpa [#allocation3], 0  ;;  %s881_s0 = inlined_call_operand.vmem [shape: s32[1,64], index: 0, kind: input, shape index: {}]   ;;  %s882_s1 = inlined_call_operand.hbm [shape: f32[2,16,16,16], index: 1, kind: input, shape index: {}]   ;;  %s883_s2 = inlined_call_operand.vmem [shape: f32[2,4,16,64], index: 2, kind: output, shape index: {}]  }
   0x1   :  { %9 = vsyncpa [#allocation3 + $0x1], 0  ;;  %s716_s9 = smov 0   ;;  %s718_s10 = smov 0  }
   0x2   :  { %s720_s11 = smov 0   ;;  %s722_s12 = smov 0  }
   0x3   :  { %s724_s13 = smov 0   ;;  %s726_s14 = smov 0  }
   0x4 LB: > { %s501_s15 = sadd.s32 4294967295, %s693_s14   ;;  %s27_s16 = sadd.s32 1, %s689_s13  ;;  %s693_s14 = sphi %s726_s14, %s15_s14   ;;  %s689_s13 = sphi %s724_s13, %s891_s13   ;;  %s685_s12 = sphi %s722_s12, %s890_s12   ;;  %s681_s11 = sphi %s720_s11, %s889_s11   ;;  %s677_s10 = sphi %s718_s10, %s888_s10   ;;  %s673_s9 = sphi %s716_s9, %s887_s9  }
   0x5   : > { %p29_p0 = scmp.ge.s32.totalorder %s27_s16, 2  ;;  %s57_s17 = sadd.s32 1, %s681_s11 }
   0x6   : > { %p64_p1 = scmp.ne.s32.totalorder %s681_s11, %s677_s10  ;;  %p65_p2 = scmp.eq.s32.totalorder %s693_s14, 0 }
   0x7   : > { %s893_s16 = smov (%p29_p0, %s27_s16), 0  ;;  %p70_p4 = scmp.ne.s32.totalorder %s677_s10, %s673_s9 }
   0x8   : > { %p752_p3 = por %p65_p2, %p64_p1  ;;  %s52_s19 = ssub.s32 %s689_s13, %s893_s16 }
   0x9   : > { %p71_p5 = scmp.eq.s32.totalorder %s501_s15, 0  ;;  %p55_p6 = scmp.eq.s32.totalorder %s52_s19, 0 }
   0xa   : > { %p559_p8 = scmp.lt.s32.totalorder %s693_s14, 2  ;;  %s125_s22 = sand.u32 1, %s681_s11  }
   0xb   : > { %p759_p7 = por %p71_p5, %p70_p4  ;;  %s551_s23 = sshll.u32 %s689_s13, 12 }
   0xc   : > { %s765_s21 = scalar_select %p55_p6, %s681_s11, %s57_s17  }
   0xd   : > { %s505_s24 = sshll.u32 %s125_s22, 8  ;;  %s137_s27 = scalar_lea.hbm %s882_s1, %s551_s23 }
   0xe   : > { %s129_s28 = scalar_lea.vmem [#allocation2], %s505_s24  ;;  %p774_p9 = pnand %p559_p8, %p752_p3 }
   0xf   : > { %s138_s29 = sshll.u32 %s129_s28, 4  ;;  %s126_s3 = scalar_lea.sflag [#allocation3], %s125_s22  ;;  %s139_s29 = int_to_ptr.vmem [resolvable:$true] %s138_s29 }
  0x10   : > { %p617_p10 = pneg %p774_p9  ;;  %s628_s4 = scalar_lea.vmem %s139_s29, 4096 }
  0x11   : > { %p629_p11 = scmp.ne.s32.totalorder %s139_s29, %s628_s4  ;;  %s695_s5 = smov [#allocation2]  }
  0x12   : > { %s633_s6 = sshll.u32 %s695_s5, 4  ;;  %s634_s6 = int_to_ptr.vmem [resolvable:$false] %s633_s6 }
  0x13   : > { %p631_p12 = pnand %p629_p11, %p617_p10  ;;  %s635_s7 = scalar_lea.vmem %s634_s6, 8192 }
  0x14   : > { %p636_p0 = scmp.lt.s32.totalorder %s139_s29, %s634_s6  ;;  %p637_p1 = scmp.lt.s32.totalorder %s635_s7, %s628_s4 }
  0x15   : > { %p632_p13 = pneg %p631_p12 }
  0x16   : > { %p638_p2 = por %p637_p1, %p636_p0 }
  0x18   : > { %p639_p3 = pnand %p638_p2, %p632_p13 }
  0x1a   : > { %642 = shalt.err (!%p639_p3)
}
  0x1b   : > { %s696_s8 = smov 128   ;;  %s697_s9 = smov 8  }
  0x1c   : > { %558 = dma.hbm_to_vmem [thread:$0]  (!%p774_p9), %s137_s27, 4096, %s139_s29, %s126_s3, %s696_s8, %s696_s8, %s697_s9  }
  0x1d   : > { %p508_p4 = scmp.ge.s32.totalorder %s693_s14, 1  ;;  %p146_p5 = scmp.lt.s32.totalorder %s693_s14, 3 }
  0x1f   : > { %p147_p6 = pnand %p508_p4, %p146_p5 }
  0x20   : > { %s152_s15 = sand.u32 (!%p147_p6), 1, %s677_s10  }
  0x21   : > { %150 = sbr.rel (%p147_p6) target bundleno = 326 (0x146), region = 28  ;;  %s509_s17 = sshll.u32 (!%p147_p6), %s152_s15, 8 }
  0x22   : > { %s153_s18 = scalar_lea.sflag (!%p147_p6), [#allocation3], %s152_s15  ;;  %s785_s19 = scalar_lea.vmem (!%p147_p6), [#allocation2], %s509_s17 }
  0x26   : > { %668 = dma.done.wait (%p759_p7), %s153_s18, 4096  }
  0x27   : > { %670 = vsyncadd (%p759_p7), %s153_s18, 4294963200  ;;  %v521_v0 = vld [vmem:[%s785_s19 + $0x50] sm:$0xff]  ;;  %s698_s22 = smov 16   ;;  %v522_v2 = vld [vmem:[%s785_s19 + $0x58] sm:$0xff]  ;;  %s699_s24 = smov 32   ;;  %vm232_vm1 = vcmask 130048  }
  0x28   : > { %v513_v1 = vld [vmem:[%s785_s19 + $0x10] sm:$0xff]  ;;  %267 = vrot.lane.b32.xlu1 %v521_v0, %s698_s22  ;;  %v514_v3 = vld [vmem:[%s785_s19 + $0x18] sm:$0xff]  ;;  %v512_v8 = vld [vmem:[%s881_s0] ss:$0 sm:$0xff]  ;;  %s700_s25 = smov 48   ;;  %vm235_vm2 = vcmask 261120  }
  0x29   : > { %210 = vrot.lane.b32.xlu0 %v513_v1, %s698_s22  ;;  %v532_v4 = vld [vmem:[%s785_s19 + $0x98] sm:$0xff]  ;;  %v531_v5 = vld [vmem:[%s785_s19 + $0x90] sm:$0xff]  ;;  %v516_v9 = vld [vmem:[%s785_s19 + $0x28] sm:$0xff]  ;;  %v242_v11 = vadd.s32 64, %v512_v8  ;;  %vm241_vm0 = vcmp.lt.s32.totalorder %v512_v8, 0  ;;  %vm238_vm3 = vcmask 392192  }
  0x2a   : > { %v542_v6 = vld [vmem:[%s785_s19 + $0xd8] sm:$0xff]  ;;  %v541_v7 = vld [vmem:[%s785_s19 + $0xd0] sm:$0xff]  ;;  %v515_v10 = vld [vmem:[%s785_s19 + $0x20] sm:$0xff]  ;;  %p183_p7 = scmp.lt.s32.totalorder %s685_s12, 1  ;;  %vm250_vm4 = vcmask 523264  }
  0x2b   : > { %v243_v12 = vsel %vm241_vm0, %v242_v11, %v512_v8  ;;  %v524_v13 = vld [vmem:[%s785_s19 + $0x68] sm:$0xff]  ;;  %v523_v14 = vld [vmem:[%s785_s19 + $0x60] sm:$0xff]  ;;  %v518_v19 = vld [vmem:[%s785_s19 + $0x38] sm:$0xff] }
  0x2c   : > { %269 = vrot.lane.b32.xlu1 %v522_v2, %s698_s22  ;;  %613 = vset.pattern.permute.xlu0 %v243_v12  ;;  %v534_v15 = vld [vmem:[%s785_s19 + $0xa8] sm:$0xff]  ;;  %v533_v16 = vld [vmem:[%s785_s19 + $0xa0] sm:$0xff]  ;;  %v517_v20 = vld [vmem:[%s785_s19 + $0x30] sm:$0xff]  ;;  %s895_s12 = smov (!%p183_p7, %s685_s12), 1 }
  0x2d   : > { %212 = vrot.lane.b32.xlu0 %v514_v3, %s698_s22  ;;  %614 = vset.pattern.permute.xlu1 %v243_v12  ;;  %v544_v17 = vld [vmem:[%s785_s19 + $0xe8] sm:$0xff]  ;;  %v543_v18 = vld [vmem:[%s785_s19 + $0xe0] sm:$0xff]  ;;  %v526_v21 = vld [vmem:[%s785_s19 + $0x78] sm:$0xff]  ;;  %s552_s26 = sshll.u32 %s895_s12, 6 }
  0x2e   : > { %v525_v22 = vld [vmem:[%s785_s19 + $0x70] sm:$0xff]  ;;  %v536_v23 = vld [vmem:[%s785_s19 + $0xb8] sm:$0xff]  ;;  %v197_v41 = vld [vmem:[%s785_s19] sm:$0xff]  ;;  %s190_s29 = scalar_lea.vmem %s883_s2, %s552_s26 }
  0x2f   : > { %v535_v24 = vld [vmem:[%s785_s19 + $0xb0] sm:$0xff]  ;;  %v546_v25 = vld [vmem:[%s785_s19 + $0xf8] sm:$0xff]  ;;  %v198_v42 = vld [vmem:[%s785_s19 + $0x8] sm:$0xff] }
  0x30   : > { %320 = vrot.lane.b32.xlu1 %v532_v4, %s698_s22  ;;  %v545_v26 = vld [vmem:[%s785_s19 + $0xf0] sm:$0xff]  ;;  %v519_v47 = vld [vmem:[%s785_s19 + $0x40] sm:$0xff]  ;;  %v520_v48 = vld [vmem:[%s785_s19 + $0x48] sm:$0xff] }
  0x31   : > { %318 = vrot.lane.b32.xlu0 %v531_v5, %s698_s22  ;;  %v530_v57 = vld [vmem:[%s785_s19 + $0x88] sm:$0xff]  ;;  %v529_v58 = vld [vmem:[%s785_s19 + $0x80] sm:$0xff] }
  0x32   : > { %v540_v3 = vld [vmem:[%s785_s19 + $0xc8] sm:$0xff]  ;;  %v539_v4 = vld [vmem:[%s785_s19 + $0xc0] sm:$0xff] }
  0x34   : > { %371 = vrot.lane.b32.xlu1 %v542_v6, %s698_s22 }
  0x35   : > { %369 = vrot.lane.b32.xlu0 %v541_v7, %s698_s22 }
  0x38   : > { %220 = vrot.lane.b32.xlu1 %v516_v9, %s699_s24 }
  0x39   : > { %218 = vrot.lane.b32.xlu0 %v515_v10, %s699_s24 }
  0x3c   : > { %277 = vrot.lane.b32.xlu1 %v524_v13, %s699_s24 }
  0x3d   : > { %275 = vrot.lane.b32.xlu0 %v523_v14, %s699_s24 }
  0x40   : > { %328 = vrot.lane.b32.xlu1 %v534_v15, %s699_s24 }
  0x41   : > { %326 = vrot.lane.b32.xlu0 %v533_v16, %s699_s24 }
  0x44   : > { %379 = vrot.lane.b32.xlu1 %v544_v17, %s699_s24 }
  0x45   : > { %377 = vrot.lane.b32.xlu0 %v543_v18, %s699_s24 }
  0x48   : > { %228 = vrot.lane.b32.xlu1 %v518_v19, %s700_s25 }
  0x49   : > { %226 = vrot.lane.b32.xlu0 %v517_v20, %s700_s25 }
  0x4c   : > { %285 = vrot.lane.b32.xlu1 %v526_v21, %s700_s25 }
  0x4d   : > { %283 = vrot.lane.b32.xlu0 %v525_v22, %s700_s25 }
  0x50   : > { %336 = vrot.lane.b32.xlu1 %v536_v23, %s700_s25 }
  0x51   : > { %334 = vrot.lane.b32.xlu0 %v535_v24, %s700_s25 }
  0x54   : > { %387 = vrot.lane.b32.xlu1 %v546_v25, %s700_s25 }
  0x55   : > { %385 = vrot.lane.b32.xlu0 %v545_v26, %s700_s25 }
  0x9a   : > { %v268_v27 = vpop.permute.xlu1 %267 }
  0x9b   : > { %v211_v28 = vpop.permute.xlu0 %210  ;;  %v289_v55 = vsel %vm232_vm1, %v519_v47, %v268_v27 }
  0x9c   : > { %v233_v45 = vsel %vm232_vm1, %v197_v41, %v211_v28 }
  0x9e   : > { %v270_v29 = vpop.permute.xlu1 %269 }
  0x9f   : > { %v213_v30 = vpop.permute.xlu0 %212  ;;  %v290_v56 = vsel %vm232_vm1, %v520_v48, %v270_v29 }
  0xa0   : > { %v234_v46 = vsel %vm232_vm1, %v198_v42, %v213_v30 }
  0xa2   : > { %v321_v31 = vpop.permute.xlu1 %320 }
  0xa3   : > { %v319_v32 = vpop.permute.xlu0 %318  ;;  %v341_v1 = vsel %vm232_vm1, %v530_v57, %v321_v31 }
  0xa4   : > { %v340_v2 = vsel %vm232_vm1, %v529_v58, %v319_v32 }
  0xa6   : > { %v372_v33 = vpop.permute.xlu1 %371 }
  0xa7   : > { %v370_v34 = vpop.permute.xlu0 %369  ;;  %v392_v11 = vsel %vm232_vm1, %v540_v3, %v372_v33 }
  0xa8   : > { %v391_v12 = vsel %vm232_vm1, %v539_v4, %v370_v34 }
  0xaa   : > { %v221_v35 = vpop.permute.xlu1 %220 }
  0xab   : > { %v219_v36 = vpop.permute.xlu0 %218  ;;  %v237_v49 = vsel %vm235_vm2, %v234_v46, %v221_v35 }
  0xac   : > { %v236_v50 = vsel %vm235_vm2, %v233_v45, %v219_v36 }
  0xae   : > { %v278_v37 = vpop.permute.xlu1 %277 }
  0xaf   : > { %v276_v38 = vpop.permute.xlu0 %275  ;;  %v292_v59 = vsel %vm235_vm2, %v290_v56, %v278_v37 }
  0xb0   : > { %v291_v60 = vsel %vm235_vm2, %v289_v55, %v276_v38 }
  0xb2   : > { %v329_v39 = vpop.permute.xlu1 %328 }
  0xb3   : > { %v327_v40 = vpop.permute.xlu0 %326  ;;  %v343_v5 = vsel %vm235_vm2, %v341_v1, %v329_v39 }
  0xb4   : > { %v342_v6 = vsel %vm235_vm2, %v340_v2, %v327_v40 }
  0xb6   : > { %v380_v43 = vpop.permute.xlu1 %379 }
  0xb7   : > { %v378_v44 = vpop.permute.xlu0 %377  ;;  %v394_v13 = vsel %vm235_vm2, %v392_v11, %v380_v43 }
  0xb8   : > { %v393_v14 = vsel %vm235_vm2, %v391_v12, %v378_v44 }
  0xba   : > { %v229_v51 = vpop.permute.xlu1 %228 }
  0xbb   : > { %v227_v52 = vpop.permute.xlu0 %226  ;;  %v240_v53 = vsel %vm238_vm3, %v237_v49, %v229_v51 }
  0xbc   : > { %v239_v54 = vsel %vm238_vm3, %v236_v50, %v227_v52  ;;  %248 = vperm.xlu1 %614, %v240_v53  }
  0xbd   : > { %245 = vperm.xlu0 %613, %v239_v54  }
  0xbe   : > { %v286_v61 = vpop.permute.xlu1 %285 }
  0xbf   : > { %v284_v62 = vpop.permute.xlu0 %283  ;;  %v294_v0 = vsel %vm238_vm3, %v292_v59, %v286_v61 }
  0xc0   : > { %v293_v63 = vsel %vm238_vm3, %v291_v60, %v284_v62 }
  0xc1   : > { %296 = vperm.xlu1 %614, %v293_v63   ;;  %299 = vperm.xlu0 %613, %v294_v0  }
  0xc2   : > { %v337_v7 = vpop.permute.xlu1 %336 }
  0xc3   : > { %v335_v8 = vpop.permute.xlu0 %334  ;;  %v345_v10 = vsel %vm238_vm3, %v343_v5, %v337_v7 }
  0xc4   : > { %v344_v9 = vsel %vm238_vm3, %v342_v6, %v335_v8 }
  0xc5   : > { %347 = vperm.xlu1 %614, %v344_v9   ;;  %350 = vperm.xlu0 %613, %v345_v10  }
  0xc6   : > { %v388_v15 = vpop.permute.xlu1 %387 }
  0xc7   : > { %v386_v16 = vpop.permute.xlu0 %385  ;;  %v396_v18 = vsel %vm238_vm3, %v394_v13, %v388_v15 }
  0xc8   : > { %v395_v17 = vsel %vm238_vm3, %v393_v14, %v386_v16 }
  0xc9   : > { %398 = vperm.xlu1 %614, %v395_v17   ;;  %401 = vperm.xlu0 %613, %v396_v18  }
 0x137   : > { %v249_v19 = vpop.permute.xlu1 %248 }
 0x138   : > { %v246_v20 = vpop.permute.xlu0 %245  ;;  %252 = vst.msk [vmem:[%s190_s29 + $0x8] sm:$0xff] %vm250_vm4, %v249_v19 }
 0x139   : > { %251 = vst.msk [vmem:[%s190_s29] sm:$0xff] %vm250_vm4, %v246_v20 }
 0x13c   : > { %v297_v21 = vpop.permute.xlu1 %296  ;;  %v300_v22 = vpop.permute.xlu0 %299 }
 0x13d   : > { %527 = vst.msk [vmem:[%s190_s29 + $0x10] sm:$0xff] %vm250_vm4, %v297_v21  ;;  %528 = vst.msk [vmem:[%s190_s29 + $0x18] sm:$0xff] %vm250_vm4, %v300_v22 }
 0x140   : > { %v348_v23 = vpop.permute.xlu1 %347  ;;  %v351_v24 = vpop.permute.xlu0 %350 }
 0x141   : > { %537 = vst.msk [vmem:[%s190_s29 + $0x20] sm:$0xff] %vm250_vm4, %v348_v23  ;;  %538 = vst.msk [vmem:[%s190_s29 + $0x28] sm:$0xff] %vm250_vm4, %v351_v24 }
 0x144   : > { %v399_v25 = vpop.permute.xlu1 %398  ;;  %v402_v26 = vpop.permute.xlu0 %401 }
 0x145   : > { %547 = vst.msk [vmem:[%s190_s29 + $0x30] sm:$0xff] %vm250_vm4, %v399_v25  ;;  %548 = vst.msk [vmem:[%s190_s29 + $0x38] sm:$0xff] %vm250_vm4, %v402_v26 }
 0x146 PF: > { %s15_s14 = sadd.s32 1, %s693_s14   ;;  %s887_s9 = smov %s677_s10 }
 0x147   : > { %p12_p8 = scmp.ge.s32.totalorder %s15_s14, 4   ;;  %s888_s10 = smov %s681_s11 }
 0x148   : > { %s889_s11 = smov %s765_s21  ;;  %s890_s12 = smov %s689_s13 }
 0x149   : > { %s891_s13 = smov %s893_s16  ;;  %14 = sbr.rel (!%p12_p8) target bundleno = 4 (0x4), region = 86 }
 0x14e   :  { %436 = vsyncpa [#allocation3], 1 }
 0x14f   :  { %438 = vsyncpa [#allocation3 + $0x1], 1 }

</bundles_post_ra>
